<compile_context>
chip_gen: v7x
topology: tpu7x:2x2x1
jax: 0.10.0
libtpu: 0.0.40
codegen_flags: <defaults>
</compile_context>

<pallas_src>
import jax
import jax.numpy as jnp
from jax.experimental import pallas as pl
from jax.experimental.pallas import tpu as pltpu

EPS = 1e-5  # torch.nn.LayerNorm default


def _round_up(x, m):
    return m * ((x + m - 1) // m)


def _vmem_capacity_bytes():
    try:
        return int(pltpu.get_tpu_info().vmem_capacity_bytes)
    except Exception:
        return 64 * 1024 * 1024  # conservative fallback: v7x per-TC VMEM


def _layernorm(x_f32, gb_f32):
    # Fused single pass over x: E[x] and E[x^2] together (one fewer XLU
    # reduction than centering first). Biased variance + eps, matching torch.
    mean = jnp.mean(x_f32, axis=-1, keepdims=True)
    mean_sq = jnp.mean(x_f32 * x_f32, axis=-1, keepdims=True)
    var = mean_sq - mean * mean
    x_hat = (x_f32 - mean) * jax.lax.rsqrt(var + EPS)
    return x_hat * gb_f32[0:1, :] + gb_f32[1:2, :]


# ---------------------------------------------------------------------------
# Kernels
# ---------------------------------------------------------------------------

def _prenorm_resident_kernel(x_ref, gb_ref, w_ref, b_ref, o_ref):
    # grid = (row_tiles,). W / bias / gamma-beta block indices are constant, so
    # they are DMA'd once and stay resident in VMEM for the whole x stream.
    x = x_ref[...].astype(jnp.float32)
    y = _layernorm(x, gb_ref[...].astype(jnp.float32))
    out = jnp.dot(y.astype(w_ref.dtype), w_ref[...],
                  preferred_element_type=jnp.float32)
    o_ref[...] = (out + b_ref[...].astype(jnp.float32)).astype(o_ref.dtype)


def _prenorm_tiled_cached_kernel(x_ref, gb_ref, w_ref, b_ref, o_ref, y_ref):
    # grid = (row_tiles, h_tiles), H axis inner + "arbitrary".
    # LayerNorm (VPU/XLU/EUP work + cast) runs once per row tile and the
    # normalized, weight-dtype activations are cached for the remaining H tiles.
    @pl.when(pl.program_id(1) == 0)
    def _():
        x = x_ref[...].astype(jnp.float32)
        y = _layernorm(x, gb_ref[...].astype(jnp.float32))
        y_ref[...] = y.astype(y_ref.dtype)

    out = jnp.dot(y_ref[...], w_ref[...], preferred_element_type=jnp.float32)
    o_ref[...] = (out + b_ref[...].astype(jnp.float32)).astype(o_ref.dtype)


def _prenorm_tiled_nocache_kernel(x_ref, gb_ref, w_ref, b_ref, o_ref):
    # Used only when there is a single row tile: no LN reuse is possible across
    # row tiles anyway, and keeping both grid axes "parallel" lets v7x's two
    # TensorCores split the H tiles.
    x = x_ref[...].astype(jnp.float32)
    y = _layernorm(x, gb_ref[...].astype(jnp.float32))
    out = jnp.dot(y.astype(w_ref.dtype), w_ref[...],
                  preferred_element_type=jnp.float32)
    o_ref[...] = (out + b_ref[...].astype(jnp.float32)).astype(o_ref.dtype)


# ---------------------------------------------------------------------------
# Wrapper / factory (one-time parameter prep, per-call x tiling)
# ---------------------------------------------------------------------------

def make_prenorm_linear(gamma, beta, w, b, *, tile_rows=256, tile_cols=512,
                        force_tiled=False):
    """Build a fused forward: x (..., D) -> LayerNorm_D(x) @ W + b, shape (..., H).

    `w` is stored as (D, H), i.e. PyTorch's Linear weight transposed.
    All parameter padding / stacking happens once here (hoisted off the hot
    path); the returned callable is jitted and only pads x when the token
    count is not tile-aligned.
    """
    D, H = w.shape
    assert gamma.shape == (D,) and beta.shape == (D,) and b.shape == (H,)
    assert tile_rows % 8 == 0 and tile_cols % 128 == 0

    itw = jnp.dtype(w.dtype).itemsize
    h_lane = _round_up(H, 128)

    vmem_phys = _vmem_capacity_bytes()
    # Leave 16 MiB headroom for Mosaic internal scratch; never clamp to the
    # entire physical VMEM (64 MiB on v7x) — v5e/v6e keep their 128 MiB budget.
    vmem_ceiling = max(32 * 1024 * 1024, vmem_phys - 16 * 1024 * 1024)

    # Resident-W feasibility estimate (double-buffered tiles + f32 temps).
    est_resident = (2 * tile_rows * D * 4           # x tile
                    + 2 * 2 * D * 4                 # gamma/beta
                    + 2 * D * h_lane * itw          # W (full, resident)
                    + 2 * h_lane * 4                # bias
                    + 2 * tile_rows * h_lane * 4    # out tile
                    + 4 * tile_rows * max(D, h_lane) * 4)   # f32 LN/acc temps
    resident = (not force_tiled) and est_resident <= int(0.7 * vmem_ceiling)

    if resident:
        tc = h_lane
        h_pad = h_lane
    else:
        tc = min(tile_cols, h_lane)
        h_pad = _round_up(H, tc)

    # One-time parameter prep (not in the per-call hot path).
    gb = jnp.stack([gamma.astype(jnp.float32), beta.astype(jnp.float32)], 0)
    w_p = w if h_pad == H else jnp.pad(w, ((0, 0), (0, h_pad - H)))
    b_p = b.reshape(1, H).astype(jnp.float32)
    if h_pad != H:
        b_p = jnp.pad(b_p, ((0, 0), (0, h_pad - H)))

    def forward(x):
        lead = x.shape[:-1]
        assert x.shape[-1] == D, "feature dim mismatch"
        R = 1
        for s in lead:
            R *= s
        x2 = x.reshape(R, D)

        # Clamp the row tile to the (8-aligned) token count: tiny batches do
        # not get padded to 256 rows.
        tm = min(tile_rows, _round_up(max(R, 1), 8))
        r_pad = _round_up(R, tm)
        if r_pad != R:
            x2 = jnp.pad(x2, ((0, r_pad - R), (0, 0)))
        row_tiles = r_pad // tm

        if resident:
            est = (2 * tm * D * 4 + 2 * 2 * D * 4 + 2 * D * h_pad * itw
                   + 2 * h_pad * 4 + 2 * tm * h_pad * 4
                   + 4 * tm * max(D, h_pad) * 4)
            vmem_limit = int(min(max(est, 32 * 1024 * 1024), vmem_ceiling))
            out2 = pl.pallas_call(
                _prenorm_resident_kernel,
                out_shape=jax.ShapeDtypeStruct((r_pad, h_pad), x.dtype),
                grid_spec=pltpu.PrefetchScalarGridSpec(
                    num_scalar_prefetch=0,
                    grid=(row_tiles,),
                    in_specs=[
                        pl.BlockSpec((tm, D), lambda i: (i, 0)),        # x rows
                        pl.BlockSpec((2, D), lambda i: (0, 0)),         # gamma/beta
                        pl.BlockSpec((D, h_pad), lambda i: (0, 0)),     # W resident
                        pl.BlockSpec((1, h_pad), lambda i: (0, 0)),     # bias
                    ],
                    out_specs=pl.BlockSpec((tm, h_pad), lambda i: (i, 0)),
                ),
                compiler_params=pltpu.CompilerParams(
                    dimension_semantics=("parallel",),
                    vmem_limit_bytes=vmem_limit,
                ),
            )(x2, gb, w_p, b_p)
        else:
            h_tiles = h_pad // tc
            est = (2 * tm * D * 4 + 2 * 2 * D * 4 + 2 * D * tc * itw
                   + 2 * tc * 4 + 2 * tm * tc * 4
                   + tm * D * itw                      # LN cache scratch
                   + 4 * tm * max(D, tc) * 4)
            vmem_limit = int(min(max(est, 32 * 1024 * 1024), vmem_ceiling))

            if row_tiles == 1 and h_tiles > 1:
                kernel = _prenorm_tiled_nocache_kernel
                scratch = []
                dims = ("parallel", "parallel")
            else:
                kernel = _prenorm_tiled_cached_kernel
                scratch = [pltpu.VMEM((tm, D), w_p.dtype)]
                dims = ("parallel", "arbitrary")

            out2 = pl.pallas_call(
                kernel,
                out_shape=jax.ShapeDtypeStruct((r_pad, h_pad), x.dtype),
                grid_spec=pltpu.PrefetchScalarGridSpec(
                    num_scalar_prefetch=0,
                    grid=(row_tiles, h_tiles),
                    in_specs=[
                        pl.BlockSpec((tm, D), lambda i, j: (i, 0)),     # x rows
                        pl.BlockSpec((2, D), lambda i, j: (0, 0)),      # gamma/beta
                        pl.BlockSpec((D, tc), lambda i, j: (0, j)),     # W cols
                        pl.BlockSpec((1, tc), lambda i, j: (0, j)),     # bias cols
                    ],
                    out_specs=pl.BlockSpec((tm, tc), lambda i, j: (i, j)),
                    scratch_shapes=scratch,
                ),
                compiler_params=pltpu.CompilerParams(
                    dimension_semantics=dims,
                    vmem_limit_bytes=vmem_limit,
                ),
            )(x2, gb, w_p, b_p)

        out = out2[:R, :H]
        return out.reshape(*lead, H)

    return jax.jit(forward)


# ---------------------------------------------------------------------------
# Pure-JAX reference (torch semantics)
# ---------------------------------------------------------------------------

def reference(x, gamma, beta, w, b):
    xf = x.astype(jnp.float32)
    mean = jnp.mean(xf, axis=-1, keepdims=True)
    var = jnp.mean((xf - mean) ** 2, axis=-1, keepdims=True)
    y = (xf - mean) * jax.lax.rsqrt(var + EPS)
    y = y * gamma.astype(jnp.float32) + beta.astype(jnp.float32)
    out = jnp.dot(y.astype(w.dtype), w, preferred_element_type=jnp.float32)
    out = out + b.astype(jnp.float32)
    return out.astype(x.dtype)


if __name__ == "__main__":
    key = jax.random.PRNGKey(0)
    kx, kg, kb, kw, kbias = jax.random.split(key, 5)

    B, N, D, H = 2, 8, 128, 256
    x = jax.random.normal(kx, (B, N, D), dtype=jnp.float32)
    gamma = jnp.ones((D,), jnp.float32) + 0.1 * jax.random.normal(kg, (D,), jnp.float32)
    beta = 0.1 * jax.random.normal(kb, (D,), jnp.float32)
    w = jax.random.normal(kw, (D, H), jnp.float32) / jnp.sqrt(D)
    b = 0.1 * jax.random.normal(kbias, (H,), jnp.float32)

    # 1) f32, resident-W path (tight tolerance); exercises row padding (R=16).
    fwd = make_prenorm_linear(gamma, beta, w, b)
    out = jax.block_until_ready(fwd(x))
    ref = reference(x, gamma, beta, w, b)
    assert out.shape == (B, N, H)
    assert jnp.allclose(out, ref, atol=1e-4, rtol=1e-4), "f32 resident mismatch"

    # 2) bf16, resident path with H padding (H=192 -> padded to 256 lanes).
    Hb = 192
    xb = x.astype(jnp.bfloat16)
    wb = (jax.random.normal(kw, (D, Hb), jnp.float32) / jnp.sqrt(D)).astype(jnp.bfloat16)
    bb = 0.1 * jax.random.normal(kbias, (Hb,), jnp.float32)
    fwd_b = make_prenorm_linear(gamma, beta, wb, bb)
    outb = jax.block_until_ready(fwd_b(xb))
    refb = reference(xb, gamma, beta, wb, bb)
    assert outb.shape == (B, N, Hb)
    assert jnp.allclose(outb.astype(jnp.float32), refb.astype(jnp.float32),
                        atol=5e-2, rtol=5e-2), "bf16 mismatch"

    # 3) Forced H-tiled path with LN cache (grid (2, 2), "arbitrary" H axis).
    fwd_t = make_prenorm_linear(gamma, beta, w, b, tile_rows=8, tile_cols=128,
                                force_tiled=True)
    out_t = jax.block_until_ready(fwd_t(x))
    assert jnp.allclose(out_t, ref, atol=1e-4, rtol=1e-4), "tiled(cached) mismatch"

    # 4) Forced H-tiled path, single row tile -> no-cache / both-parallel variant.
    fwd_t1 = make_prenorm_linear(gamma, beta, w, b, tile_cols=128,
                                 force_tiled=True)
    out_t1 = jax.block_until_ready(fwd_t1(x))
    assert jnp.allclose(out_t1, ref, atol=1e-4, rtol=1e-4), "tiled(nocache) mismatch"

    print("KERNEL_OK")
</pallas_src>

<mosaic_0001>
module attributes {stable_mosaic.version = 11 : i64} {
  func.func @_prenorm_resident_kernel(%arg0: i32, %arg1: memref<16x128xf32, #tpu.memory_space<vmem>>, %arg2: memref<2x128xf32, #tpu.memory_space<vmem>>, %arg3: memref<128x256xf32, #tpu.memory_space<vmem>>, %arg4: memref<1x256xf32, #tpu.memory_space<vmem>>, %arg5: memref<16x256xf32, #tpu.memory_space<vmem>>) attributes {dimension_semantics = [#tpu.dimension_semantics<parallel>], iteration_bounds = array<i64: 1>, scalar_prefetch = 0 : i64, scratch_operands = 0 : i64, tpu.core_type = #tpu.core_type<tc>, window_params = [{transform_indices = @transform_0, window_bounds = array<i64: 16, 128>}, {pipeline_mode = #tpu.pipeline_mode<synchronous>, transform_indices = @transform_1, window_bounds = array<i64: 2, 128>}, {pipeline_mode = #tpu.pipeline_mode<synchronous>, transform_indices = @transform_2, window_bounds = array<i64: 128, 256>}, {pipeline_mode = #tpu.pipeline_mode<synchronous>, transform_indices = @transform_3, window_bounds = array<i64: 1, 256>}, {transform_indices = @transform_4, window_bounds = array<i64: 16, 256>}]} {
    %c0 = arith.constant 0 : index
    %c0_0 = arith.constant 0 : index
    %0 = vector.load %arg1[%c0, %c0_0] : memref<16x128xf32, #tpu.memory_space<vmem>>, vector<16x128xf32>
    %c0_1 = arith.constant 0 : index
    %c0_2 = arith.constant 0 : index
    %1 = vector.load %arg2[%c0_1, %c0_2] : memref<2x128xf32, #tpu.memory_space<vmem>>, vector<2x128xf32>
    %cst = arith.constant dense<0.000000e+00> : vector<16xf32>
    %2 = vector.multi_reduction <add>, %0, %cst [1] : vector<16x128xf32> to vector<16xf32>
    %3 = vector.shape_cast %2 : vector<16xf32> to vector<16x1xf32>
    %cst_3 = arith.constant 1.280000e+02 : f32
    %4 = vector.broadcast %cst_3 : f32 to vector<16x1xf32>
    %5 = arith.divf %3, %4 : vector<16x1xf32>
    %6 = arith.mulf %0, %0 : vector<16x128xf32>
    %cst_4 = arith.constant dense<0.000000e+00> : vector<16xf32>
    %7 = vector.multi_reduction <add>, %6, %cst_4 [1] : vector<16x128xf32> to vector<16xf32>
    %8 = vector.shape_cast %7 : vector<16xf32> to vector<16x1xf32>
    %cst_5 = arith.constant 1.280000e+02 : f32
    %9 = vector.broadcast %cst_5 : f32 to vector<16x1xf32>
    %10 = arith.divf %8, %9 : vector<16x1xf32>
    %11 = arith.mulf %5, %5 : vector<16x1xf32>
    %12 = arith.subf %10, %11 : vector<16x1xf32>
    %13 = vector.broadcast %5 : vector<16x1xf32> to vector<16x128xf32>
    %14 = arith.subf %0, %13 : vector<16x128xf32>
    %cst_6 = arith.constant 9.99999974E-6 : f32
    %15 = vector.broadcast %cst_6 : f32 to vector<16x1xf32>
    %16 = arith.addf %12, %15 : vector<16x1xf32>
    %17 = math.rsqrt %16 : vector<16x1xf32>
    %18 = vector.broadcast %17 : vector<16x1xf32> to vector<16x128xf32>
    %19 = arith.mulf %14, %18 : vector<16x128xf32>
    %20 = vector.extract_strided_slice %1 {offsets = [0, 0], sizes = [1, 128], strides = [1, 1]} : vector<2x128xf32> to vector<1x128xf32>
    %21 = vector.broadcast %20 : vector<1x128xf32> to vector<16x128xf32>
    %22 = arith.mulf %19, %21 : vector<16x128xf32>
    %23 = vector.extract_strided_slice %1 {offsets = [1, 0], sizes = [1, 128], strides = [1, 1]} : vector<2x128xf32> to vector<1x128xf32>
    %24 = vector.broadcast %23 : vector<1x128xf32> to vector<16x128xf32>
    %25 = arith.addf %22, %24 : vector<16x128xf32>
    %c0_7 = arith.constant 0 : index
    %c0_8 = arith.constant 0 : index
    %26 = vector.load %arg3[%c0_7, %c0_8] : memref<128x256xf32, #tpu.memory_space<vmem>>, vector<128x256xf32>
    %cst_9 = arith.constant dense<0.000000e+00> : vector<16x256xf32>
    %27 = tpu.matmul %25, %26, %cst_9 {dimension_numbers = #tpu.dot_dimension_numbers<[1], [0], [0], [1], [0, 0, 1, 1], [], []>} : vector<16x128xf32>, vector<128x256xf32>, vector<16x256xf32> -> vector<16x256xf32>
    %c0_10 = arith.constant 0 : index
    %c0_11 = arith.constant 0 : index
    %28 = vector.load %arg4[%c0_10, %c0_11] : memref<1x256xf32, #tpu.memory_space<vmem>>, vector<1x256xf32>
    %29 = vector.broadcast %28 : vector<1x256xf32> to vector<16x256xf32>
    %30 = arith.addf %27, %29 : vector<16x256xf32>
    %c0_12 = arith.constant 0 : index
    %c0_13 = arith.constant 0 : index
    %31 = vector.load %arg5[%c0_12, %c0_13] : memref<16x256xf32, #tpu.memory_space<vmem>>, vector<16x256xf32>
    tpu.vector_store %arg5[%c0_12, %c0_13], %30 {strides = array<i32>} : memref<16x256xf32, #tpu.memory_space<vmem>>, vector<16x256xf32>,
    return
  }
  func.func @transform_0(%arg0: i32) -> (i32, i32) {
    %c0_i32 = arith.constant 0 : i32
    %c0_i32_0 = arith.constant 0 : i32
    return %arg0, %c0_i32 : i32, i32
  }
  func.func @transform_1(%arg0: i32) -> (i32, i32) {
    %c0_i32 = arith.constant 0 : i32
    %c0_i32_0 = arith.constant 0 : i32
    %c0_i32_1 = arith.constant 0 : i32
    return %c0_i32, %c0_i32_0 : i32, i32
  }
  func.func @transform_2(%arg0: i32) -> (i32, i32) {
    %c0_i32 = arith.constant 0 : i32
    %c0_i32_0 = arith.constant 0 : i32
    %c0_i32_1 = arith.constant 0 : i32
    return %c0_i32, %c0_i32_0 : i32, i32
  }
  func.func @transform_3(%arg0: i32) -> (i32, i32) {
    %c0_i32 = arith.constant 0 : i32
    %c0_i32_0 = arith.constant 0 : i32
    %c0_i32_1 = arith.constant 0 : i32
    return %c0_i32, %c0_i32_0 : i32, i32
  }
  func.func @transform_4(%arg0: i32) -> (i32, i32) {
    %c0_i32 = arith.constant 0 : i32
    %c0_i32_0 = arith.constant 0 : i32
    return %arg0, %c0_i32 : i32, i32
  }
}

</mosaic_0001>

<bundles_post_ra>
// kernel: forward.1
= control target key start
LH: loop header
LB: loop body
LE: loop exit
PB: predicated region body
PF: predicated region fallthrough
CT: control target
= control target key end

     0   :  { %9 = vsyncpa [#allocation3], 0  ;;  %s456_s0 = inlined_call_operand.hbm [shape: f32[16,128], index: 0, kind: input, shape index: {}]   ;;  %s457_s1 = inlined_call_operand.vmem [shape: f32[2,128], index: 1, kind: input, shape index: {}]   ;;  %s458_s2 = inlined_call_operand.hbm [shape: f32[128,256], index: 2, kind: input, shape index: {}]   ;;  %s459_s3 = inlined_call_operand.vmem [shape: f32[1,256], index: 3, kind: input, shape index: {}]   ;;  %s460_s4 = inlined_call_operand.hbm [shape: f32[16,256], index: 4, kind: output, shape index: {}]  }
   0x1   :  { %10 = vsyncpa [#allocation6], 0 }
   0x2   :  { %11 = vsyncpa [#allocation4], 0  ;;  %s363_s15 = smov [#allocation2]   ;;  %s291_s19 = scalar_lea.hbm %s456_s0, 256 }
   0x3   :  { %s17_s16 = sshll.u32 %s363_s15, 4  ;;  %p292_p0 = scmp.ne.s32.totalorder %s456_s0, %s291_s19  ;;  %s18_s16 = int_to_ptr.vmem [resolvable:$true] %s17_s16 }
   0x4   :  { %p295_p1 = scmp.lt.u32.totalorder %s291_s19, %s456_s0 }
   0x6   :  { %p297_p2 = pnand %p295_p1, %p292_p0 }
   0x8   :  { %300 = shalt.err (!%p297_p2)
}
   0x9   :  { %s301_s24 = scalar_lea.vmem %s18_s16, 256  ;;  %p306_p4 = scmp.lt.s32.totalorder %s18_s16, %s18_s16 }
   0xa   :  { %p302_p3 = scmp.ne.s32.totalorder %s18_s16, %s301_s24  ;;  %p307_p5 = scmp.lt.s32.totalorder %s301_s24, %s301_s24 }
   0xc   :  { %p308_p6 = por %p307_p5, %p306_p4 }
   0xe   :  { %p309_p7 = pnand %p308_p6, %p302_p3 }
  0x10   :  { %312 = shalt.err (!%p309_p7)
}
  0x11   :  { %s364_s25 = smov 128   ;;  %s365_s26 = smov 8  }
  0x12   :  { %23 = dma.hbm_to_vmem [thread:$0]  %s456_s0, 256, %s18_s16, [#allocation3], %s364_s25, %s364_s25, %s365_s26  }
  0x13   :  { %s366_s29 = smov [#allocation5]   ;;  %s313_s7 = scalar_lea.hbm %s458_s2, 4096 }
  0x14   :  { %s31_s30 = sshll.u32 %s366_s29, 4  ;;  %p314_p8 = scmp.ne.s32.totalorder %s458_s2, %s313_s7  ;;  %s32_s30 = int_to_ptr.vmem [resolvable:$true] %s31_s30 }
  0x15   :  { %p317_p9 = scmp.lt.u32.totalorder %s313_s7, %s458_s2 }
  0x17   :  { %p319_p10 = pnand %p317_p9, %p314_p8 }
  0x19   :  { %322 = shalt.err (!%p319_p10)
}
  0x1a   :  { %s323_s12 = scalar_lea.vmem %s32_s30, 4096  ;;  %p328_p12 = scmp.lt.s32.totalorder %s32_s30, %s32_s30 }
  0x1b   :  { %p324_p11 = scmp.ne.s32.totalorder %s32_s30, %s323_s12  ;;  %p329_p13 = scmp.lt.s32.totalorder %s323_s12, %s323_s12 }
  0x1d   :  { %p330_p0 = por %p329_p13, %p328_p12 }
  0x1f   :  { %p331_p1 = pnand %p330_p0, %p324_p11 }
  0x21   :  { %334 = shalt.err (!%p331_p1)
}
  0x22   :  { %s367_s0 = smov 256   ;;  %s368_s13 = smov 16  }
  0x23   :  { %37 = dma.hbm_to_vmem [thread:$0]  %s458_s2, 4096, %s32_s30, [#allocation6], %s367_s0, %s367_s0, %s368_s13  }
  0x24   :  { %357 = dma.done.wait [#allocation3], 256  }
  0x25   :  { %358 = vsyncadd [#allocation3], 4294967040 }
  0x26   :  { %359 = dma.done.wait [#allocation6], 4096  }
  0x27   :  { %360 = vsyncadd [#allocation6], 4294963200  ;;  %v423_v0 = vld [vmem:[#allocation2] sm:$0xff]  ;;  %v425_v1 = vld [vmem:[#allocation2 + $0x8] sm:$0xff]  ;;  %v369_v51 = vmov 0.0   ;;  %v76_v62 = vlaneseq }
  0x28   :  { %v89_v2 = vld [vmem:[#allocation5 + $0x8] sm:$0xff]  ;;  %49 = vadd.xlane.f32.xlu0 %v423_v0  ;;  %v56_v3 = vmul.f32 %v423_v0, %v423_v0  ;;  %v91_v4 = vld [vmem:[#allocation5 + $0x18] sm:$0xff]  ;;  %v88_v5 = vld [vmem:[#allocation5] sm:$0xff]  ;;  %v57_v12 = vmul.f32 %v425_v1, %v425_v1  ;;  %196 = vmatprep.mubr.f32.mxu0 %v369_v51 }
  0x29   :  { %v90_v6 = vld [vmem:[#allocation5 + $0x10] sm:$0xff]  ;;  %v231_v7 = vpack.c.bf16 %v91_v4, %v89_v2  ;;  %v93_v9 = vld [vmem:[#allocation5 + $0x28] sm:$0xff]  ;;  %v95_v10 = vld [vmem:[#allocation5 + $0x38] sm:$0xff]  ;;  %202 = vmatprep.mubr.f32.mxu1 %v369_v51 }
  0x2a   :  { %v233_v8 = vpack.c.bf16 %v90_v6, %v88_v5  ;;  %v92_v11 = vld [vmem:[#allocation5 + $0x20] sm:$0xff]  ;;  %58 = vadd.xlane.f32.xlu1 %v56_v3  ;;  %v235_v13 = vpack.c.bf16 %v95_v10, %v93_v9  ;;  %v94_v14 = vld [vmem:[#allocation5 + $0x30] sm:$0xff]  ;;  %v97_v16 = vld [vmem:[#allocation5 + $0x48] sm:$0xff]  ;;  %v77_v5 = vshrl.u32 %v76_v62, 7 }
  0x2b   :  { %232 = vmatprep.subr.bf16.mxu0 %v231_v7  ;;  %263 = vmatprep.subr.bf16.mxu1 %v231_v7  ;;  %v237_v15 = vpack.c.bf16 %v94_v14, %v92_v11  ;;  %v99_v17 = vld [vmem:[#allocation5 + $0x58] sm:$0xff]  ;;  %v96_v19 = vld [vmem:[#allocation5 + $0x40] sm:$0xff]  ;;  %v98_v20 = vld [vmem:[#allocation5 + $0x50] sm:$0xff] }
  0x2c   :  { %51 = vadd.xlane.f32.xlu0 %v425_v1  ;;  %234 = vmatpush1.bf16.msra.mxu0 %v233_v8  ;;  %v239_v18 = vpack.c.bf16 %v99_v17, %v97_v16  ;;  %v241_v21 = vpack.c.bf16 %v98_v20, %v96_v19  ;;  %v101_v22 = vld [vmem:[#allocation5 + $0x68] sm:$0xff]  ;;  %v103_v23 = vld [vmem:[#allocation5 + $0x78] sm:$0xff]  ;;  %v100_v25 = vld [vmem:[#allocation5 + $0x60] sm:$0xff]  ;;  %v78_v7 = vsub.s32 0, %v77_v5  ;;  %v84_v9 = vsub.s32 1, %v77_v5 }
  0x2d   :  { %236 = vmatprep.subr.bf16.mxu0 %v235_v13  ;;  %271 = vmatpush1.bf16.msra.mxu1 %v233_v8  ;;  %v243_v24 = vpack.c.bf16 %v103_v23, %v101_v22  ;;  %v102_v26 = vld [vmem:[#allocation5 + $0x70] sm:$0xff]  ;;  %v105_v28 = vld [vmem:[#allocation5 + $0x88] sm:$0xff]  ;;  %v107_v29 = vld [vmem:[#allocation5 + $0x98] sm:$0xff] }
  0x2e   :  { %60 = vadd.xlane.f32.xlu1 %v57_v12  ;;  %264 = vmatprep.subr.bf16.mxu1 %v235_v13  ;;  %v245_v27 = vpack.c.bf16 %v102_v26, %v100_v25  ;;  %v247_v30 = vpack.c.bf16 %v107_v29, %v105_v28  ;;  %v104_v31 = vld [vmem:[#allocation5 + $0x80] sm:$0xff]  ;;  %v106_v32 = vld [vmem:[#allocation5 + $0x90] sm:$0xff]  ;;  %v109_v34 = vld [vmem:[#allocation5 + $0xa8] sm:$0xff] }
  0x2f   :  { %v249_v33 = vpack.c.bf16 %v106_v32, %v104_v31  ;;  %v111_v35 = vld [vmem:[#allocation5 + $0xb8] sm:$0xff]  ;;  %v108_v37 = vld [vmem:[#allocation5 + $0xa0] sm:$0xff]  ;;  %v110_v38 = vld [vmem:[#allocation5 + $0xb0] sm:$0xff] }
  0x30   :  { %238 = vmatpush1.bf16.msra.mxu0 %v237_v15  ;;  %v251_v36 = vpack.c.bf16 %v111_v35, %v109_v34  ;;  %v253_v39 = vpack.c.bf16 %v110_v38, %v108_v37  ;;  %v113_v40 = vld [vmem:[#allocation5 + $0xc8] sm:$0xff]  ;;  %v115_v41 = vld [vmem:[#allocation5 + $0xd8] sm:$0xff]  ;;  %v112_v42 = vld [vmem:[#allocation5 + $0xc0] sm:$0xff] }
  0x31   :  { %272 = vmatpush1.bf16.msra.mxu1 %v237_v15  ;;  %240 = vmatprep.subr.bf16.mxu0 %v239_v18  ;;  %v255_v43 = vpack.c.bf16 %v115_v41, %v113_v40  ;;  %v114_v44 = vld [vmem:[#allocation5 + $0xd0] sm:$0xff]  ;;  %v117_v45 = vld [vmem:[#allocation5 + $0xe8] sm:$0xff]  ;;  %v119_v46 = vld [vmem:[#allocation5 + $0xf8] sm:$0xff] }
  0x32   :  { %265 = vmatprep.subr.bf16.mxu1 %v239_v18  ;;  %v257_v47 = vpack.c.bf16 %v114_v44, %v112_v42  ;;  %v259_v48 = vpack.c.bf16 %v119_v46, %v117_v45  ;;  %v116_v49 = vld [vmem:[#allocation5 + $0xe0] sm:$0xff]  ;;  %v118_v50 = vld [vmem:[#allocation5 + $0xf0] sm:$0xff] }
  0x33   :  { %v261_v52 = vpack.c.bf16 %v118_v50, %v116_v49  ;;  %v48_v8 = vld [vmem:[%s457_s1] sm:$0x3]  ;;  %s370_s1 = smov [#allocation7]  }
  0x34   :  { %242 = vmatpush1.bf16.msra.mxu0 %v241_v21  ;;  %v79_v11 = vrot.slane %v48_v8, %v78_v7  ;;  %v85_v14 = vrot.slane %v48_v8, %v84_v9  ;;  %v120_v22 = vld [vmem:[%s459_s3] sm:$0x3]  ;;  %s218_s19 = sshll.u32 %s370_s1, 4  ;;  %s219_s19 = int_to_ptr.vmem [resolvable:$true] %s218_s19 }
  0x35   :  { %273 = vmatpush1.bf16.msra.mxu1 %v241_v21  ;;  %244 = vmatprep.subr.bf16.mxu0 %v243_v24  ;;  %v125_v23 = vrot.slane %v120_v22, %v78_v7  ;;  %s335_s20 = scalar_lea.vmem %s219_s19, 512  ;;  %p340_p3 = scmp.lt.s32.totalorder %s219_s19, %s219_s19 }
  0x36   :  { %266 = vmatprep.subr.bf16.mxu1 %v243_v24  ;;  %p336_p2 = scmp.ne.s32.totalorder %s219_s19, %s335_s20  ;;  %p341_p4 = scmp.lt.s32.totalorder %s335_s20, %s335_s20 }
  0x38   :  { %246 = vmatpush1.bf16.msra.mxu0 %v245_v27  ;;  %p342_p5 = por %p341_p4, %p340_p3 }
  0x39   :  { %274 = vmatpush1.bf16.msra.mxu1 %v245_v27  ;;  %248 = vmatprep.subr.bf16.mxu0 %v247_v30 }
  0x3a   :  { %267 = vmatprep.subr.bf16.mxu1 %v247_v30  ;;  %p343_p6 = pnand %p342_p5, %p336_p2 }
  0x3c   :  { %250 = vmatpush1.bf16.msra.mxu0 %v249_v33 }
  0x3d   :  { %275 = vmatpush1.bf16.msra.mxu1 %v249_v33  ;;  %252 = vmatprep.subr.bf16.mxu0 %v251_v36 }
  0x3e   :  { %268 = vmatprep.subr.bf16.mxu1 %v251_v36 }
  0x40   :  { %254 = vmatpush1.bf16.msra.mxu0 %v253_v39 }
  0x41   :  { %276 = vmatpush1.bf16.msra.mxu1 %v253_v39  ;;  %256 = vmatprep.subr.bf16.mxu0 %v255_v43 }
  0x42   :  { %269 = vmatprep.subr.bf16.mxu1 %v255_v43 }
  0x44   :  { %258 = vmatpush1.bf16.msra.mxu0 %v257_v47 }
  0x45   :  { %277 = vmatpush1.bf16.msra.mxu1 %v257_v47  ;;  %260 = vmatprep.subr.bf16.mxu0 %v259_v48 }
  0x46   :  { %270 = vmatprep.subr.bf16.mxu1 %v259_v48 }
  0x48   :  { %262 = vmatpush1.bf16.msra.mxu0 %v261_v52 }
  0x49   :  { %278 = vmatpush1.bf16.msra.mxu1 %v261_v52 }
  0xb5   :  { %v50_v53 = vpop.xlane.xlu0 %49 }
  0xb6   :  { %v54_v54 = vmul.f32 0.0078125, %v50_v53 }
  0xb7   :  { %v59_v55 = vpop.xlane.xlu1 %58 }
  0xb8   :  { %v64_v56 = vmul.f32 %v54_v54, %v54_v54  ;;  %v62_v57 = vmul.f32 0.0078125, %v59_v55  ;;  %v68_v10 = vsub.f32 %v423_v0, %v54_v54  ;;  %v129_v0 = vrot.slane %v120_v22, %v84_v9 }
  0xb9   :  { %v52_v58 = vpop.xlane.xlu0 %51 }
  0xba   :  { %v66_v59 = vsub.f32 %v62_v57, %v64_v56  ;;  %v55_v60 = vmul.f32 0.0078125, %v52_v58 }
  0xbb   :  { %v61_v61 = vpop.xlane.xlu1 %60 }
  0xbc   :  { %v70_v63 = vadd.f32 1e-05, %v66_v59  ;;  %v65_v2 = vmul.f32 %v55_v60, %v55_v60  ;;  %v63_v3 = vmul.f32 0.0078125, %v61_v61  ;;  %v69_v15 = vsub.f32 %v425_v1, %v55_v60 }
  0xbe   :  { %287 = vrsqrt.f32 %v70_v63  ;;  %v67_v4 = vsub.f32 %v63_v3, %v65_v2 }
  0xc0   :  { %v71_v6 = vadd.f32 1e-05, %v67_v4 }
  0xc2   :  { %289 = vrsqrt.f32 %v71_v6 }
  0xc8   :  { %v288_v12 = vpop.eup %287 }
  0xc9   :  { %v74_v13 = vmul.f32 %v288_v12, %v68_v10 }
  0xcb   :  { %v80_v16 = vmul.f32 %v79_v11, %v74_v13 }
  0xcc   :  { %v290_v17 = vpop.eup %289 }
  0xcd   :  { %v86_v18 = vadd.f32 %v85_v14, %v80_v16  ;;  %v75_v19 = vmul.f32 %v290_v17, %v69_v15 }
  0xcf   :  { %197 = vmatmul.mubr.f32.vlgmr.msra.gmra.mrb[0].mxu0 %v86_v18  ;;  %v81_v20 = vmul.f32 %v79_v11, %v75_v19 }
  0xd1   :  { %v87_v21 = vadd.f32 %v85_v14, %v81_v20 }
  0xd3   :  { %203 = vmatmul.mubr.f32.vlgmr.msra.gmra.mrb[0].mxu1 %v87_v21 }
 0x1a2   :  { %v198_v24 = vpop.f32.mrb[0].mxu0 }
 0x1a3   :  { %v199_v25 = vadd.f32 %v198_v24, %v125_v23  ;;  %v200_v26 = vpop.f32.mrb[1].mxu0 }
 0x1a4   :  { %v201_v27 = vadd.f32 %v200_v26, %v129_v0 }
 0x1a5   :  { %209 = vst [vmem:[#allocation7] sm:$0xff] %v199_v25 }
 0x1a6   :  { %210 = vst [vmem:[#allocation7 + $0x8] sm:$0xff] %v201_v27  ;;  %v204_v1 = vpop.f32.mrb[0].mxu1 }
 0x1a7   :  { %v205_v28 = vadd.f32 %v204_v1, %v125_v23  ;;  %v206_v29 = vpop.f32.mrb[1].mxu1 }
 0x1a8   :  { %v207_v30 = vadd.f32 %v206_v29, %v129_v0 }
 0x1a9   :  { %211 = vst [vmem:[#allocation7 + $0x10] sm:$0xff] %v205_v28 }
 0x1aa   :  { %212 = vst [vmem:[#allocation7 + $0x18] sm:$0xff] %v207_v30 }
 0x1ab   :  { %346 = shalt.err (!%p343_p6)
}
 0x1ac   :  { %s347_s22 = scalar_lea.hbm %s460_s4, 512 }
 0x1ad   :  { %p348_p7 = scmp.ne.s32.totalorder %s460_s4, %s347_s22  ;;  %p351_p8 = scmp.lt.u32.totalorder %s347_s22, %s460_s4 }
 0x1af   :  { %p353_p9 = pnand %p351_p8, %p348_p7 }
 0x1b1   :  { %356 = shalt.err (!%p353_p9)
}
 0x1b2   :  { %224 = dma.vmem_to_hbm [thread:$0]  %s219_s19, 512, %s460_s4, [#allocation4], %s367_s0, %s367_s0, %s368_s13  }
 0x1b3   :  { %361 = dma.done.wait [#allocation4], 512  }
 0x1b4   :  { %362 = vsyncadd [#allocation4], 4294966784 }
 0x1b5   :  { %228 = vsyncpa [#allocation3], 1 }
 0x1b6   :  { %229 = vsyncpa [#allocation6], 1 }
 0x1b7   :  { %230 = vsyncpa [#allocation4], 1 }

</bundles_post_ra>
